<compile_context>
chip_gen: v6e
topology: v6e:2x2x1
jax: 0.10.0
libtpu: 0.0.40
codegen_flags: <defaults>
</compile_context>

<pallas_src>
import functools

import jax
import jax.numpy as jnp
from jax import lax
from jax.experimental import pallas as pl
from jax.experimental.pallas import tpu as pltpu


def _round_up(x, m):
    return (x + m - 1) // m * m


def _vmem_capacity_bytes():
    """Physical VMEM capacity; conservative 64 MiB fallback (v7x-sized)."""
    try:
        info = pltpu.get_tpu_info()
        cap = getattr(info, "vmem_capacity_bytes", None)
        if cap:
            return int(cap)
    except Exception:
        pass
    return 64 * 1024 * 1024


def _has_bf16_vpu():
    """v6e / v7x have bf16 VALU+EUP; v5e and older do not."""
    try:
        kind = jax.devices()[0].device_kind.lower()
    except Exception:
        return False
    for old in ("v2", "v3", "v4", "v5"):
        if old in kind:
            return False
    return "tpu" in kind


def _bahdanau_kernel(q_ref, pk_ref, v_ref, mask_ref, wq_ref, we_ref, out_ref,
                     *, compute_dtype, s_chunk):
    # q_ref:    (TB, Q)        pk_ref: (TB, S, H)   v_ref: (TB, S, V)
    # mask_ref: (TB, S) i32    wq_ref: (H, Q)       we_ref: (1, H)
    # out_ref:  (TB, P) f32 slab = [context (V) | alphas (S) | zero pad]
    TB, _ = q_ref.shape
    S, H = pk_ref.shape[1], pk_ref.shape[2]
    V = v_ref.shape[2]
    P = out_ref.shape[1]

    q = q_ref[...].astype(jnp.float32)            # (TB, Q)
    wq = wq_ref[...].astype(jnp.float32)          # (H, Q)  nn.Linear: y = x @ W^T
    we = we_ref[...].astype(jnp.float32)          # (1, H)

    # query = query_layer(query): one MXU matmul for the whole batch tile.
    qp = lax.dot_general(q, wq, (((1,), (1,)), ((), ())),
                         preferred_element_type=jnp.float32)          # (TB, H)
    qp_c = qp.astype(compute_dtype)

    # energy_layer(tanh(qp + proj_key)): chunked over S so the largest temp is
    # (TB, SC, H) in compute dtype (bf16 on v6e/v7x) instead of f32 (TB, S, H).
    # Energy reduction over H stays f32 (we is f32 -> mixed multiply promotes).
    score_chunks = []
    for s0 in range(0, S, s_chunk):
        cs = min(s_chunk, S - s0)
        pk_c = pk_ref[:, s0:s0 + cs, :].astype(compute_dtype)         # (TB, cs, H)
        t = jnp.tanh(qp_c[:, None, :] + pk_c)                         # (TB, cs, H)
        score_chunks.append(jnp.sum(t * we, axis=-1))                 # (TB, cs) f32
    if len(score_chunks) == 1:
        scores = score_chunks[0]
    else:
        scores = jnp.concatenate(score_chunks, axis=-1)               # (TB, S)

    # masked_fill(mask == 0, -inf). Large finite negative avoids NaNs for
    # fully-masked (padding) rows; exp underflows to exactly 0 for masked keys.
    scores = jnp.where(mask_ref[...] == 0, jnp.float32(-1e30), scores)

    # softmax over the key axis (lane reductions, EUP approx reciprocal).
    scores = scores - jnp.max(scores, axis=-1, keepdims=True)
    e = jnp.exp(scores)
    denom = jnp.sum(e, axis=-1, keepdims=True)
    alphas = e * pl.reciprocal(denom, approx=True)                    # (TB, S)

    # context = bmm(alphas, value): chunked multiply + sublane reduce over S,
    # bounding the f32 product temp to (TB, SC, V).
    ctx = jnp.zeros((TB, V), jnp.float32)
    for s0 in range(0, S, s_chunk):
        cs = min(s_chunk, S - s0)
        v_c = v_ref[:, s0:s0 + cs, :].astype(jnp.float32)             # (TB, cs, V)
        a_c = alphas[:, s0:s0 + cs]                                   # (TB, cs)
        ctx = ctx + jnp.sum(a_c[:, :, None] * v_c, axis=1)            # (TB, V)

    # Pack into one lane-dense slab (P is a multiple of 128) -> unmasked store
    # and a dense HBM writeback line.
    parts = [ctx, alphas]
    pad_cols = P - (V + S)
    if pad_cols:
        parts.append(jnp.zeros((TB, pad_cols), jnp.float32))
    out_ref[...] = jnp.concatenate(parts, axis=-1).astype(out_ref.dtype)


def bahdanau_attention(query, proj_key, value, mask, wq, we, *,
                       batch_tile=None, compute_dtype=None):
    """query [B,1,Q], proj_key [B,S,H], value [B,S,V], mask [B,1,S];
    wq [H,Q] (query_layer weight), we [1,H] (energy_layer weight).
    proj_key/value may be bf16 (streams stay bf16; compute dtype is auto).
    Returns (context [B,1,V] in query.dtype, alphas [B,1,S] f32)."""
    B, _, Q = query.shape
    _, S, H = proj_key.shape
    V = value.shape[-1]

    # Compute dtype for the tanh chain: bf16 only if the streams are bf16 AND
    # the chip has a bf16 VPU/EUP (v6e/v7x); otherwise f32 (always f32 on v5e).
    if compute_dtype is None:
        if proj_key.dtype == jnp.bfloat16 and _has_bf16_vpu():
            compute_dtype = jnp.bfloat16
        else:
            compute_dtype = jnp.float32
    cdt = jnp.dtype(compute_dtype)

    # Lane-dense packed output width and in-kernel S chunk.
    P = _round_up(V + S, 128)
    SC = min(S, 32)

    # Lane/sublane-dense 2-D views of the singleton-dim tensors.
    q2 = query.reshape(B, Q)
    # Mask kept int32: arbitrary mask patterns must be supported to preserve
    # module semantics, and its bytes are tiny next to the pk/value streams.
    m2 = mask.reshape(B, S).astype(jnp.int32)

    # ---- VMEM-aware batch-tile sizing ------------------------------------
    vmem_cap = _vmem_capacity_bytes()
    vmem_limit = max(32 * 1024 * 1024, min(int(vmem_cap * 0.85), 112 * 1024 * 1024))
    budget = int(vmem_limit * 0.7)          # leave room for compiler temps/spills

    qb = jnp.dtype(query.dtype).itemsize
    pkb = jnp.dtype(proj_key.dtype).itemsize
    vb = jnp.dtype(value.dtype).itemsize
    cb = cdt.itemsize

    # Per-batch-row bytes: double-buffered input/output tiles + f32 temps.
    stream_row = 2 * (Q * qb + S * H * pkb + S * V * vb + S * 4 + P * 4)
    temp_row = (SC * H * cb            # tanh chunk
                + SC * V * 4           # context product chunk
                + 2 * S * 4            # scores + alphas
                + V * 4 + 2 * H * 4 + Q * 4 + P * 4)
    per_row = stream_row + int(1.5 * temp_row)
    fixed = 2 * (H * Q + H) * 4        # resident weights

    tb = max(8, ((budget - fixed) // max(per_row, 1)) // 8 * 8)
    tb = min(tb, 1024)                 # bound per-step latency
    if batch_tile is not None:
        tb = min(tb, _round_up(batch_tile, 8))
    tb = min(tb, _round_up(B, 8))
    if B > 8:
        # Guarantee >=2 grid steps: lets v7x's 2 TensorCores split the
        # "parallel" batch axis and gives the pipeline something to overlap.
        tb = min(tb, _round_up(pl.cdiv(B, 2), 8))
    TB = max(8, tb)

    Bp = _round_up(B, TB)
    pad = Bp - B
    if pad:
        q2 = jnp.pad(q2, ((0, pad), (0, 0)))
        proj_key = jnp.pad(proj_key, ((0, pad), (0, 0), (0, 0)))
        value = jnp.pad(value, ((0, pad), (0, 0), (0, 0)))
        m2 = jnp.pad(m2, ((0, pad), (0, 0)))      # padded rows fully masked

    kernel = functools.partial(_bahdanau_kernel, compute_dtype=cdt, s_chunk=SC)

    grid_spec = pltpu.PrefetchScalarGridSpec(
        num_scalar_prefetch=0,
        grid=(Bp // TB,),
        in_specs=[
            pl.BlockSpec((TB, Q), lambda b: (b, 0)),        # query (2-D)
            pl.BlockSpec((TB, S, H), lambda b: (b, 0, 0)),  # proj_key
            pl.BlockSpec((TB, S, V), lambda b: (b, 0, 0)),  # value
            pl.BlockSpec((TB, S), lambda b: (b, 0)),        # mask (2-D)
            # Tiny shared weights: constant block index -> resident, no refetch.
            pl.BlockSpec((H, Q), lambda b: (0, 0)),         # query_layer W
            pl.BlockSpec((1, H), lambda b: (0, 0)),         # energy_layer W
        ],
        out_specs=pl.BlockSpec((TB, P), lambda b: (b, 0)),  # packed slab
    )

    slab = pl.pallas_call(
        kernel,
        out_shape=jax.ShapeDtypeStruct((Bp, P), jnp.float32),
        grid_spec=grid_spec,
        compiler_params=pltpu.CompilerParams(
            dimension_semantics=("parallel",),
            vmem_limit_bytes=vmem_limit),
    )(q2, proj_key, value, m2, wq, we)

    ctx = slab[:B, :V].astype(query.dtype).reshape(B, 1, V)
    alphas = slab[:B, V:V + S].reshape(B, 1, S)
    return ctx, alphas


def _reference(query, proj_key, value, mask, wq, we):
    # Pure-JAX reference mirroring the PyTorch forward (f32 compute).
    q = jnp.einsum("bik,hk->bih", query, wq)                         # query_layer
    scores = jnp.einsum("bsh,oh->bso", jnp.tanh(q + proj_key), we)   # (B,S,1)
    scores = jnp.transpose(scores, (0, 2, 1))                        # (B,1,S)
    scores = jnp.where(mask == 0, -jnp.inf, scores)
    alphas = jax.nn.softmax(scores, axis=-1)
    context = jnp.einsum("bis,bsv->biv", alphas, value)
    return context, alphas


if __name__ == "__main__":
    key = jax.random.PRNGKey(0)
    k1, k2, k3, k4, k5, k6 = jax.random.split(key, 6)

    # hidden_size=32 -> query_size=32, energy over hidden=32, value dim = 2*hidden
    B, S, H = 2, 8, 32
    Q, V = H, 2 * H

    query = jax.random.normal(k1, (B, 1, Q), dtype=jnp.float32)
    proj_key = jax.random.normal(k2, (B, S, H), dtype=jnp.float32)
    value = jax.random.normal(k3, (B, S, V), dtype=jnp.float32)
    mask = jnp.ones((B, 1, S), dtype=jnp.int32).at[1, 0, S - 3:].set(0)

    # nn.Linear weights (bias=False). key_layer exists in __init__ but is not
    # used in forward (proj_key is given pre-projected), so it is omitted.
    wq = jax.random.normal(k4, (H, Q), dtype=jnp.float32) * 0.1  # query_layer
    we = jax.random.normal(k5, (1, H), dtype=jnp.float32) * 0.1  # energy_layer

    # --- Test 1: f32, tiny batch (exercises padding B=2 -> tile of 8) ---
    ctx, alphas = bahdanau_attention(query, proj_key, value, mask, wq, we)
    jax.block_until_ready((ctx, alphas))
    ctx_r, alphas_r = _reference(query, proj_key, value, mask, wq, we)
    assert ctx.shape == (B, 1, V) and alphas.shape == (B, 1, S)
    assert jnp.allclose(ctx, ctx_r, atol=5e-3, rtol=5e-3)
    assert jnp.allclose(alphas, alphas_r, atol=2e-3, rtol=2e-3)

    # --- Test 2: larger batch + bf16 encoder streams (HBM-bound inputs) ---
    B2, S2 = 20, 16
    query2 = jax.random.normal(k6, (B2, 1, Q), dtype=jnp.float32)
    proj_key2 = jax.random.normal(k2, (B2, S2, H), jnp.float32).astype(jnp.bfloat16)
    value2 = jax.random.normal(k3, (B2, S2, V), jnp.float32).astype(jnp.bfloat16)
    lens = (jnp.arange(B2) % S2) + 1                      # >=1 valid key per row
    mask2 = (jnp.arange(S2)[None, :] < lens[:, None]).astype(jnp.int32)[:, None, :]

    ctx2_r, alphas2_r = _reference(query2, proj_key2.astype(jnp.float32),
                                   value2.astype(jnp.float32), mask2, wq, we)

    # 2a) forced f32 compute (tight tolerance; reference also computes in f32
    #     on the bf16-rounded inputs).
    ctx2b, alphas2b = bahdanau_attention(query2, proj_key2, value2, mask2, wq, we,
                                         compute_dtype=jnp.float32)
    jax.block_until_ready((ctx2b, alphas2b))
    assert jnp.allclose(ctx2b, ctx2_r, atol=5e-3, rtol=5e-3)
    assert jnp.allclose(alphas2b, alphas2_r, atol=2e-3, rtol=2e-3)

    # 2b) auto compute dtype: on v6e/v7x the tanh chain runs in bf16, which
    #     adds ~2^-8 rounding on the add/tanh -> looser tolerance here.
    ctx2, alphas2 = bahdanau_attention(query2, proj_key2, value2, mask2, wq, we)
    jax.block_until_ready((ctx2, alphas2))
    assert jnp.allclose(ctx2, ctx2_r, atol=3e-2, rtol=3e-2)
    assert jnp.allclose(alphas2, alphas2_r, atol=2e-2, rtol=2e-2)

    print("KERNEL_OK")
</pallas_src>

<mosaic_0001>
module attributes {stable_mosaic.version = 11 : i64} {
  func.func @_bahdanau_kernel(%arg0: i32, %arg1: memref<8x32xf32, #tpu.memory_space<vmem>>, %arg2: memref<8x8x32xf32, #tpu.memory_space<vmem>>, %arg3: memref<8x8x64xf32, #tpu.memory_space<vmem>>, %arg4: memref<8x8xi32, #tpu.memory_space<vmem>>, %arg5: memref<32x32xf32, #tpu.memory_space<vmem>>, %arg6: memref<1x32xf32, #tpu.memory_space<vmem>>, %arg7: memref<8x128xf32, #tpu.memory_space<vmem>>) attributes {dimension_semantics = [#tpu.dimension_semantics<parallel>], iteration_bounds = array<i64: 1>, scalar_prefetch = 0 : i64, scratch_operands = 0 : i64, tpu.core_type = #tpu.core_type<tc>, window_params = [{transform_indices = @transform_0, window_bounds = array<i64: 8, 32>}, {transform_indices = @transform_1, window_bounds = array<i64: 8, 8, 32>}, {transform_indices = @transform_2, window_bounds = array<i64: 8, 8, 64>}, {transform_indices = @transform_3, window_bounds = array<i64: 8, 8>}, {pipeline_mode = #tpu.pipeline_mode<synchronous>, transform_indices = @transform_4, window_bounds = array<i64: 32, 32>}, {pipeline_mode = #tpu.pipeline_mode<synchronous>, transform_indices = @transform_5, window_bounds = array<i64: 1, 32>}, {transform_indices = @transform_6, window_bounds = array<i64: 8, 128>}]} {
    %c0 = arith.constant 0 : index
    %c0_0 = arith.constant 0 : index
    %0 = vector.load %arg1[%c0, %c0_0] : memref<8x32xf32, #tpu.memory_space<vmem>>, vector<8x32xf32>
    %c0_1 = arith.constant 0 : index
    %c0_2 = arith.constant 0 : index
    %1 = vector.load %arg5[%c0_1, %c0_2] : memref<32x32xf32, #tpu.memory_space<vmem>>, vector<32x32xf32>
    %c0_3 = arith.constant 0 : index
    %c0_4 = arith.constant 0 : index
    %2 = vector.load %arg6[%c0_3, %c0_4] : memref<1x32xf32, #tpu.memory_space<vmem>>, vector<1x32xf32>
    %cst = arith.constant dense<0.000000e+00> : vector<8x32xf32>
    %3 = tpu.matmul %0, %1, %cst {dimension_numbers = #tpu.dot_dimension_numbers<[1], [1], [0], [0], [0, 0, 1, 0], [], []>} : vector<8x32xf32>, vector<32x32xf32>, vector<8x32xf32> -> vector<8x32xf32>
    %c0_5 = arith.constant 0 : index
    %c0_6 = arith.constant 0 : index
    %c0_7 = arith.constant 0 : index
    %4 = vector.load %arg2[%c0_5, %c0_6, %c0_7] : memref<8x8x32xf32, #tpu.memory_space<vmem>>, vector<8x8x32xf32>
    %5 = vector.shape_cast %3 : vector<8x32xf32> to vector<8x1x32xf32>
    %6 = vector.broadcast %5 : vector<8x1x32xf32> to vector<8x8x32xf32>
    %7 = arith.addf %6, %4 : vector<8x8x32xf32>
    %8 = math.tanh %7 : vector<8x8x32xf32>
    %9 = vector.shape_cast %2 : vector<1x32xf32> to vector<1x1x32xf32>
    %10 = vector.broadcast %9 : vector<1x1x32xf32> to vector<8x8x32xf32>
    %11 = arith.mulf %8, %10 : vector<8x8x32xf32>
    %cst_8 = arith.constant dense<0.000000e+00> : vector<8x8xf32>
    %12 = vector.multi_reduction <add>, %11, %cst_8 [2] : vector<8x8x32xf32> to vector<8x8xf32>
    %c0_9 = arith.constant 0 : index
    %c0_10 = arith.constant 0 : index
    %13 = vector.load %arg4[%c0_9, %c0_10] : memref<8x8xi32, #tpu.memory_space<vmem>>, vector<8x8xi32>
    %c0_i32 = arith.constant 0 : i32
    %14 = vector.broadcast %c0_i32 : i32 to vector<8x8xi32>
    %15 = arith.cmpi eq, %13, %14 : vector<8x8xi32>
    %cst_11 = arith.constant -1.000000e+30 : f32
    %16 = vector.broadcast %cst_11 : f32 to vector<8x8xf32>
    %17 = arith.select %15, %16, %12 : vector<8x8xi1>, vector<8x8xf32>
    %cst_12 = arith.constant dense<0xFF800000> : vector<8xf32>
    %18 = vector.multi_reduction <maximumf>, %17, %cst_12 [1] : vector<8x8xf32> to vector<8xf32>
    %19 = vector.shape_cast %18 : vector<8xf32> to vector<8x1xf32>
    %20 = vector.broadcast %19 : vector<8x1xf32> to vector<8x8xf32>
    %21 = arith.subf %17, %20 : vector<8x8xf32>
    %22 = math.exp %21 : vector<8x8xf32>
    %cst_13 = arith.constant dense<0.000000e+00> : vector<8xf32>
    %23 = vector.multi_reduction <add>, %22, %cst_13 [1] : vector<8x8xf32> to vector<8xf32>
    %24 = vector.shape_cast %23 : vector<8xf32> to vector<8x1xf32>
    %25 = tpu.reciprocal %24 {approx = true} : vector<8x1xf32> -> vector<8x1xf32>
    %26 = vector.broadcast %25 : vector<8x1xf32> to vector<8x8xf32>
    %27 = arith.mulf %22, %26 : vector<8x8xf32>
    %cst_14 = arith.constant 0.000000e+00 : f32
    %28 = vector.broadcast %cst_14 : f32 to vector<8x64xf32>
    %c0_15 = arith.constant 0 : index
    %c0_16 = arith.constant 0 : index
    %c0_17 = arith.constant 0 : index
    %29 = vector.load %arg3[%c0_15, %c0_16, %c0_17] : memref<8x8x64xf32, #tpu.memory_space<vmem>>, vector<8x8x64xf32>
    %30 = vector.shape_cast %27 : vector<8x8xf32> to vector<8x8x1xf32>
    %31 = vector.broadcast %30 : vector<8x8x1xf32> to vector<8x8x64xf32>
    %32 = arith.mulf %31, %29 : vector<8x8x64xf32>
    %cst_18 = arith.constant dense<0.000000e+00> : vector<8x64xf32>
    %33 = vector.multi_reduction <add>, %32, %cst_18 [1] : vector<8x8x64xf32> to vector<8x64xf32>
    %34 = arith.addf %28, %33 : vector<8x64xf32>
    %cst_19 = arith.constant 0.000000e+00 : f32
    %35 = vector.broadcast %cst_19 : f32 to vector<8x56xf32>
    %36 = tpu.concatenate %34, %27, %35 in 1 : vector<8x64xf32>, vector<8x8xf32>, vector<8x56xf32> -> vector<8x128xf32>
    %c0_20 = arith.constant 0 : index
    %c0_21 = arith.constant 0 : index
    %37 = vector.load %arg7[%c0_20, %c0_21] : memref<8x128xf32, #tpu.memory_space<vmem>>, vector<8x128xf32>
    tpu.vector_store %arg7[%c0_20, %c0_21], %36 {strides = array<i32>} : memref<8x128xf32, #tpu.memory_space<vmem>>, vector<8x128xf32>,
    return
  }
  func.func @transform_0(%arg0: i32) -> (i32, i32) {
    %c0_i32 = arith.constant 0 : i32
    %c0_i32_0 = arith.constant 0 : i32
    return %arg0, %c0_i32 : i32, i32
  }
  func.func @transform_1(%arg0: i32) -> (i32, i32, i32) {
    %c0_i32 = arith.constant 0 : i32
    %c0_i32_0 = arith.constant 0 : i32
    %c0_i32_1 = arith.constant 0 : i32
    return %arg0, %c0_i32, %c0_i32_0 : i32, i32, i32
  }
  func.func @transform_2(%arg0: i32) -> (i32, i32, i32) {
    %c0_i32 = arith.constant 0 : i32
    %c0_i32_0 = arith.constant 0 : i32
    %c0_i32_1 = arith.constant 0 : i32
    return %arg0, %c0_i32, %c0_i32_0 : i32, i32, i32
  }
  func.func @transform_3(%arg0: i32) -> (i32, i32) {
    %c0_i32 = arith.constant 0 : i32
    %c0_i32_0 = arith.constant 0 : i32
    return %arg0, %c0_i32 : i32, i32
  }
  func.func @transform_4(%arg0: i32) -> (i32, i32) {
    %c0_i32 = arith.constant 0 : i32
    %c0_i32_0 = arith.constant 0 : i32
    %c0_i32_1 = arith.constant 0 : i32
    return %c0_i32, %c0_i32_0 : i32, i32
  }
  func.func @transform_5(%arg0: i32) -> (i32, i32) {
    %c0_i32 = arith.constant 0 : i32
    %c0_i32_0 = arith.constant 0 : i32
    %c0_i32_1 = arith.constant 0 : i32
    return %c0_i32, %c0_i32_0 : i32, i32
  }
  func.func @transform_6(%arg0: i32) -> (i32, i32) {
    %c0_i32 = arith.constant 0 : i32
    %c0_i32_0 = arith.constant 0 : i32
    return %arg0, %c0_i32 : i32, i32
  }
}

</mosaic_0001>

<bundles_post_ra>
// kernel: tpu_custom_call.1
= control target key start
LH: loop header
LB: loop body
LE: loop exit
PB: predicated region body
PF: predicated region fallthrough
CT: control target
= control target key end

     0   :  { %11 = vsyncpa [#allocation3], 0  ;;  %s902_s0 = inlined_call_operand.hbm [shape: f32[8,32], index: 0, kind: input, shape index: {}]   ;;  %s903_s1 = inlined_call_operand.hbm [shape: f32[8,8,32], index: 1, kind: input, shape index: {}]   ;;  %s904_s2 = inlined_call_operand.hbm [shape: f32[8,8,64], index: 2, kind: input, shape index: {}]   ;;  %s905_s3 = inlined_call_operand.hbm [shape: s32[8,8], index: 3, kind: input, shape index: {}]   ;;  %s906_s4 = inlined_call_operand.hbm [shape: f32[32,32], index: 4, kind: input, shape index: {}]   ;;  %s907_s5 = inlined_call_operand.vmem [shape: f32[1,32], index: 5, kind: input, shape index: {}]   ;;  %s908_s6 = inlined_call_operand.hbm [shape: f32[8,128], index: 6, kind: output, shape index: {}]  }
   0x1   :  { %12 = vsyncpa [#allocation6], 0 }
   0x2   :  { %13 = vsyncpa [#allocation9], 0 }
   0x3   :  { %14 = vsyncpa [#allocation4], 0  ;;  %s764_s21 = smov [#allocation5]  }
   0x4   :  { %s30_s22 = sshll.u32 %s764_s21, 4  ;;  %s31_s22 = int_to_ptr.vmem [resolvable:$true] %s30_s22 }
   0x5   :  { %s644_s23 = scalar_lea.vmem %s31_s22, 1024  ;;  %p649_p1 = scmp.lt.s32.totalorder %s31_s22, %s31_s22 }
   0x6   :  { %p645_p0 = scmp.ne.s32.totalorder %s31_s22, %s644_s23  ;;  %p650_p2 = scmp.lt.s32.totalorder %s644_s23, %s644_s23 }
   0x8   :  { %p651_p3 = por %p650_p2, %p649_p1 }
   0xa   :  { %p652_p4 = pnand %p651_p3, %p645_p0 }
   0xc   :  { %655 = shalt.err (!%p652_p4)
}
   0xd   :  { %s765_s24 = smov 128   ;;  %s766_s25 = smov 8  }
   0xe   :  { %36 = dma.hbm_to_vmem [thread:$0]  %s903_s1, 1024, %s31_s22, [#allocation6], %s765_s24, %s765_s24, %s766_s25  }
   0xf   :  { %s767_s28 = smov [#allocation8]   ;;  %s768_s30 = smov [#allocation2]  }
  0x10   :  { %s55_s29 = sshll.u32 %s767_s28, 4  ;;  %s21_s7 = sshll.u32 %s768_s30, 4  ;;  %s56_s29 = int_to_ptr.vmem [resolvable:$true] %s55_s29  ;;  %s22_s7 = int_to_ptr.vmem [resolvable:$true] %s21_s7 }
  0x11   :  { %s664_s8 = scalar_lea.vmem %s56_s29, 128  ;;  %p669_p6 = scmp.lt.s32.totalorder %s56_s29, %s56_s29 }
  0x12   :  { %p665_p5 = scmp.ne.s32.totalorder %s56_s29, %s664_s8  ;;  %p670_p7 = scmp.lt.s32.totalorder %s664_s8, %s664_s8 }
  0x14   :  { %p671_p8 = por %p670_p7, %p669_p6 }
  0x16   :  { %p672_p9 = pnand %p671_p8, %p665_p5 }
  0x18   :  { %675 = shalt.err (!%p672_p9)
}
  0x19   :  { %58 = dma.hbm_to_vmem [thread:$0]  %s905_s3, 128, %s56_s29, [#allocation9]  }
  0x1a   :  { %s684_s11 = scalar_lea.vmem %s22_s7, 128  ;;  %p689_p11 = scmp.lt.s32.totalorder %s22_s7, %s22_s7 }
  0x1b   :  { %p685_p10 = scmp.ne.s32.totalorder %s22_s7, %s684_s11  ;;  %p690_p12 = scmp.lt.s32.totalorder %s684_s11, %s684_s11 }
  0x1d   :  { %p691_p13 = por %p690_p12, %p689_p11 }
  0x1f   :  { %p692_p0 = pnand %p691_p13, %p685_p10 }
  0x21   :  { %695 = shalt.err (!%p692_p0)
}
  0x22   :  { %24 = dma.hbm_to_vmem [thread:$0]  %s902_s0, 128, %s22_s7, [#allocation3]  }
  0x23   :  { %s769_s13 = smov [#allocation7]   ;;  %s770_s15 = smov [#allocation10]  }
  0x24   :  { %s42_s14 = sshll.u32 %s769_s13, 4  ;;  %s64_s16 = sshll.u32 %s770_s15, 4  ;;  %s43_s14 = int_to_ptr.vmem [resolvable:$true] %s42_s14  ;;  %s65_s16 = int_to_ptr.vmem [resolvable:$true] %s64_s16 }
  0x25   :  { %s704_s17 = scalar_lea.vmem %s43_s14, 1024  ;;  %p709_p2 = scmp.lt.s32.totalorder %s43_s14, %s43_s14 }
  0x26   :  { %p705_p1 = scmp.ne.s32.totalorder %s43_s14, %s704_s17  ;;  %p710_p3 = scmp.lt.s32.totalorder %s704_s17, %s704_s17 }
  0x28   :  { %p711_p4 = por %p710_p3, %p709_p2 }
  0x2a   :  { %p712_p5 = pnand %p711_p4, %p705_p1 }
  0x2c   :  { %715 = shalt.err (!%p712_p5)
}
  0x2d   :  { %48 = dma.hbm_to_vmem [thread:$0]  %s904_s2, 1024, %s43_s14, [#allocation6], %s765_s24, %s765_s24, %s766_s25  }
  0x2e   :  { %s724_s0 = scalar_lea.vmem %s65_s16, 512  ;;  %p729_p7 = scmp.lt.s32.totalorder %s65_s16, %s65_s16 }
  0x2f   :  { %p725_p6 = scmp.ne.s32.totalorder %s65_s16, %s724_s0  ;;  %p730_p8 = scmp.lt.s32.totalorder %s724_s0, %s724_s0 }
  0x31   :  { %p731_p9 = por %p730_p8, %p729_p7 }
  0x33   :  { %p732_p10 = pnand %p731_p9, %p725_p6 }
  0x35   :  { %735 = shalt.err (!%p732_p10)
}
  0x36   :  { %70 = dma.hbm_to_vmem [thread:$0]  %s906_s4, 512, %s65_s16, [#allocation9], %s765_s24, %s765_s24, %s766_s25  }
  0x37   :  { %756 = dma.done.wait [#allocation3], 128  }
  0x38   :  { %757 = vsyncadd [#allocation3], 4294967168 }
  0x39   :  { %758 = dma.done.wait [#allocation6], 2048  }
  0x3a   :  { %759 = vsyncadd [#allocation6], 4294965248 }
  0x3b   :  { %760 = dma.done.wait [#allocation9], 640  }
  0x3c   :  { %761 = vsyncadd [#allocation9], 4294966656  ;;  %v771_v0 = vmov 0.0   ;;  %vm772_vm0 = vmmov 0   ;;  %vm94_vm1 = vcmask 261120   ;;  %v92_v1 = vld [vmem:[#allocation10 + $0x18] sm:$0xff]  ;;  %v193_v8 = vlaneseq }
  0x3d   :  { %593 = vmatprep.subr.mxu0 %v771_v0  ;;  %601 = vmatprep.mubr.msk.f32.mxu0 %vm772_vm0, %v771_v0  ;;  %v91_v2 = vld [vmem:[#allocation10 + $0x10] sm:$0xff]  ;;  %v90_v3 = vld [vmem:[#allocation10 + $0x8] sm:$0xff]  ;;  %v89_v4 = vld [vmem:[#allocation10] sm:$0xff]  ;;  %v773_v6 = vmov 1966171168   ;;  %vm376_vm2 = vcmask 1041409  }
  0x3e   :  { %594 = vmatpush3.xpose.msk.msra.mxu0 %vm94_vm1, %v92_v1  ;;  %v88_v5 = vld [vmem:[#allocation2] sm:$0xff]  ;;  %v191_v7 = vunpack.c.l.s4 %v773_v6  ;;  %v841_v10 = vshrl.u32 %v193_v8, 7  ;;  %v180_v20 = vld [vmem:[#allocation5] sm:$0xff]  ;;  %v181_v26 = vld [vmem:[#allocation5 + $0x8] sm:$0xff]  ;;  %vm378_vm3 = vcmask 1042434   ;;  %vm380_vm4 = vcmask 1043459  }
  0x3f   :  { %595 = vmatprep.subr.mxu0 %v771_v0  ;;  %v182_v27 = vld [vmem:[#allocation5 + $0x10] sm:$0xff]  ;;  %v183_v32 = vld [vmem:[#allocation5 + $0x18] sm:$0xff]  ;;  %v184_v33 = vld [vmem:[#allocation5 + $0x20] sm:$0xff]  ;;  %vm382_vm5 = vcmask 1044484   ;;  %vm384_vm6 = vcmask 1045509   ;;  %vm386_vm7 = vcmask 1046534  }
  0x40   :  { %v192_v9 = vunpack.c.0.s8 %v191_v7  ;;  %v845_v15 = vsub.s32 0, %v841_v10  ;;  %v185_v40 = vld [vmem:[#allocation5 + $0x28] sm:$0xff]  ;;  %v186_v44 = vld [vmem:[#allocation5 + $0x30] sm:$0xff]  ;;  %v187_v49 = vld [vmem:[#allocation5 + $0x38] sm:$0xff]  ;;  %vm388_vm8 = vcmask 1047559   ;;  %vm392_vm10 = vcmask 64512  }
  0x41   :  { %v587_v52 = vld [vmem:[%s907_s5] ss:$0 sm:$0xff]  ;;  %s774_s5 = smov 64   ;;  %vm476_vm11 = vcmask 523264   ;;  %s775_s21 = smov [#allocation11]   ;;  %vm562_vm12 = vcmask 588800  }
  0x42   :  { %596 = vmatpush3.xpose.msk.msra.mxu0 %vm94_vm1, %v91_v2  ;;  %v195_v11 = vsub.s32 %v192_v9, %v841_v10  ;;  %s571_s22 = sshll.u32 %s775_s21, 4  ;;  %s572_s22 = int_to_ptr.vmem [resolvable:$true] %s571_s22 }
  0x43   :  { %597 = vmatprep.subr.mxu0 %v771_v0  ;;  %s736_s23 = scalar_lea.vmem %s572_s22, 128  ;;  %p741_p12 = scmp.lt.s32.totalorder %s572_s22, %s572_s22 }
  0x44   :  { %p737_p11 = scmp.ne.s32.totalorder %s572_s22, %s736_s23  ;;  %p742_p13 = scmp.lt.s32.totalorder %s736_s23, %s736_s23 }
  0x46   :  { %598 = vmatpush3.xpose.msk.msra.mxu0 %vm94_vm1, %v90_v3  ;;  %p743_p0 = por %p742_p13, %p741_p12 }
  0x47   :  { %599 = vmatprep.subr.mxu0 %v771_v0 }
  0x48   :  { %p744_p1 = pnand %p743_p0, %p737_p11 }
  0x4a   :  { %600 = vmatpush3.xpose.msk.msra.mxu0 %vm94_vm1, %v89_v4 }
  0x4d   :  { %602 = vmatmul.mubr.msk.f32.vlgmr.msra.gmra.mxu0 %vm94_vm1, %v88_v5 }
 0x10d   :  { %v176_v12 = vpop.f32.mrf.mxu0 }
 0x10e   :  { %v189_v13 = vcombine.high %v176_v12, %v176_v12  ;;  %v196_v14 = vrot.slane %v176_v12, %v195_v11 }
 0x10f   :  { %v603_v16 = vpop.f32.mrf.mxu0 }
 0x110   :  { %v203_v17 = vrot.slane %v189_v13, %v195_v11  ;;  %v204_v18 = vcombine.high %v196_v14, %v196_v14  ;;  %v212_v19 = vrot.slane %v196_v14, %v195_v11  ;;  %v343_v16 = vand.u32 127, %v193_v8 }
 0x112   :  { %v205_v21 = vcombine.high %v203_v17, %v203_v17  ;;  %v219_v22 = vrot.slane %v203_v17, %v195_v11  ;;  %v226_v23 = vrot.slane %v204_v18, %v195_v11  ;;  %v234_v24 = vcombine.high %v212_v19, %v212_v19 }
 0x113   :  { %v241_v25 = vrot.slane %v212_v19, %v845_v15  ;;  %v346_v18 = vsub.s32 %v343_v16, %v841_v10 }
 0x114   :  { %v233_v28 = vrot.slane %v205_v21, %v195_v11  ;;  %v235_v29 = vcombine.high %v219_v22, %v219_v22  ;;  %v236_v30 = vcombine.high %v226_v23, %v226_v23  ;;  %v245_v31 = vrot.slane %v226_v23, %v845_v15 }
 0x115   :  { %v249_v34 = vrot.slane %v234_v24, %v845_v15  ;;  %v257_v35 = vrot.slane %v219_v22, %v845_v15  ;;  %v278_v36 = vadd.f32 %v241_v25, %v180_v20 }
 0x116   :  { %v237_v37 = vcombine.high %v233_v28, %v233_v28  ;;  %v253_v38 = vrot.slane %v236_v30, %v845_v15  ;;  %v261_v39 = vrot.slane %v233_v28, %v845_v15  ;;  %v265_v41 = vrot.slane %v235_v29, %v845_v15 }
 0x117   :  { %v279_v42 = vadd.f32 %v245_v31, %v181_v26  ;;  %v280_v43 = vadd.f32 %v249_v34, %v182_v27  ;;  %616 = vtanh.f32 %v278_v36  ;;  %v282_v46 = vadd.f32 %v257_v35, %v184_v33  ;;  %v332_v35 = vld [vmem:[#allocation8] sm:$0xff] }
 0x118   :  { %v281_v45 = vadd.f32 %v253_v38, %v183_v32  ;;  %v269_v47 = vrot.slane %v237_v37, %v845_v15  ;;  %v283_v48 = vadd.f32 %v261_v39, %v185_v40  ;;  %v284_v50 = vadd.f32 %v265_v41, %v186_v44 }
 0x119   :  { %618 = vtanh.f32 %v279_v42  ;;  %vm333_vm9 = vcmp.eq.s32.totalorder %v332_v35, 0  ;;  %v409_v35 = vld [vmem:[#allocation7 + $0x28] sm:$0xff] }
 0x11a   :  { %620 = vtanh.f32 %v280_v43  ;;  %v285_v51 = vadd.f32 %v269_v47, %v187_v49  ;;  %v421_v49 = vsub.s32 1, %v841_v10 }
 0x11b   :  { %622 = vtanh.f32 %v281_v45 }
 0x11c   :  { %624 = vtanh.f32 %v282_v46 }
 0x11d   :  { %626 = vtanh.f32 %v283_v48 }
 0x11e   :  { %628 = vtanh.f32 %v284_v50 }
 0x11f   :  { %630 = vtanh.f32 %v285_v51 }
 0x124   :  { %v617_v53 = vpop.eup %616 }
 0x125   :  { %v300_v54 = vmul.f32 %v617_v53, %v587_v52 }
 0x126   :  { %v619_v55 = vpop.eup %618 }
 0x127   :  { %v621_v56 = vpop.eup %620  ;;  %v308_v57 = vsel %vm94_vm1, %v300_v54, 0.0  ;;  %v301_v58 = vmul.f32 %v619_v55, %v587_v52  ;;  %v428_v54 = vsub.s32 2, %v841_v10  ;;  %v442_v55 = vsub.s32 4, %v841_v10 }
 0x128   :  { %v623_v59 = vpop.eup %622  ;;  %309 = vadd.xlane.f32.xlu0 %v308_v57  ;;  %v302_v60 = vmul.f32 %v621_v56, %v587_v52 }
 0x129   :  { %v625_v61 = vpop.eup %624  ;;  %v303_v63 = vmul.f32 %v623_v59, %v587_v52  ;;  %v311_v1 = vsel %vm94_vm1, %v301_v58, 0.0  ;;  %v435_v58 = vsub.s32 3, %v841_v10  ;;  %v456_v59 = vsub.s32 6, %v841_v10 }
 0x12a   :  { %v314_v62 = vsel %vm94_vm1, %v302_v60, 0.0  ;;  %v627_v0 = vpop.eup %626  ;;  %v304_v2 = vmul.f32 %v625_v61, %v587_v52 }
 0x12b   :  { %315 = vadd.xlane.f32.xlu1 %v314_v62  ;;  %v629_v3 = vpop.eup %628  ;;  %v317_v4 = vsel %vm94_vm1, %v303_v63, 0.0  ;;  %v305_v5 = vmul.f32 %v627_v0, %v587_v52  ;;  %v449_v62 = vsub.s32 5, %v841_v10  ;;  %v463_v63 = vsub.s32 7, %v841_v10 }
 0x12c   :  { %312 = vadd.xlane.f32.xlu0 %v311_v1  ;;  %v631_v6 = vpop.eup %630  ;;  %v320_v7 = vsel %vm94_vm1, %v304_v2, 0.0  ;;  %v306_v9 = vmul.f32 %v629_v3, %v587_v52  ;;  %v405_v1 = vld [vmem:[#allocation7 + $0x8] sm:$0xff]  ;;  %v404_v2 = vld [vmem:[#allocation7] sm:$0xff] }
 0x12d   :  { %v323_v11 = vsel %vm94_vm1, %v305_v5, 0.0  ;;  %v307_v12 = vmul.f32 %v631_v6, %v587_v52 }
 0x12e   :  { %v326_v13 = vsel %vm94_vm1, %v306_v9, 0.0  ;;  %v408_v9 = vld [vmem:[#allocation7 + $0x20] sm:$0xff] }
 0x12f   :  { %318 = vadd.xlane.f32.xlu1 %v317_v4  ;;  %v329_v14 = vsel %vm94_vm1, %v307_v12, 0.0 }
 0x130   :  { %321 = vadd.xlane.f32.xlu0 %v320_v7  ;;  %v406_v7 = vld [vmem:[#allocation7 + $0x10] sm:$0xff] }
 0x133   :  { %324 = vadd.xlane.f32.xlu1 %v323_v11 }
 0x134   :  { %327 = vadd.xlane.f32.xlu0 %v326_v13 }
 0x137   :  { %330 = vadd.xlane.f32.xlu1 %v329_v14 }
 0x1b1   :  { %v310_v17 = vpop.xlane.xlu0 %309 }
 0x1b2   :  { %v347_v21 = vrot.slane %v310_v17, %v346_v18 }
 0x1b4   :  { %v316_v19 = vpop.xlane.xlu1 %315 }
 0x1b5   :  { %v313_v20 = vpop.xlane.xlu0 %312  ;;  %v355_v23 = vrot.slane %v316_v19, %v346_v18 }
 0x1b6   :  { %v351_v22 = vrot.slane %v313_v20, %v346_v18 }
 0x1b8   :  { %v377_v24 = vsel %vm376_vm2, %v351_v22, %v347_v21  ;;  %v319_v25 = vpop.xlane.xlu1 %318  ;;  %v407_v21 = vld [vmem:[#allocation7 + $0x18] sm:$0xff]  ;;  %v410_v22 = vld [vmem:[#allocation7 + $0x30] sm:$0xff] }
 0x1b9   :  { %v379_v26 = vsel %vm378_vm3, %v355_v23, %v377_v24  ;;  %v359_v27 = vrot.slane %v319_v25, %v346_v18  ;;  %v322_v28 = vpop.xlane.xlu0 %321 }
 0x1ba   :  { %v363_v8 = vrot.slane %v322_v28, %v346_v18 }
 0x1bb   :  { %v381_v29 = vsel %vm380_vm4, %v359_v27, %v379_v26 }
 0x1bc   :  { %v383_v30 = vsel %vm382_vm5, %v363_v8, %v381_v29  ;;  %v325_v31 = vpop.xlane.xlu1 %324 }
 0x1bd   :  { %v367_v32 = vrot.slane %v325_v31, %v346_v18  ;;  %v328_v33 = vpop.xlane.xlu0 %327 }
 0x1be   :  { %v371_v34 = vrot.slane %v328_v33, %v346_v18 }
 0x1bf   :  { %v385_v36 = vsel %vm384_vm6, %v367_v32, %v383_v30 }
 0x1c0   :  { %v331_v37 = vpop.xlane.xlu1 %330  ;;  %v387_v38 = vsel %vm386_vm7, %v371_v34, %v385_v36 }
 0x1c1   :  { %v375_v39 = vrot.slane %v331_v37, %v346_v18 }
 0x1c3   :  { %v389_v40 = vsel %vm388_vm8, %v375_v39, %v387_v38 }
 0x1c4   :  { %v391_v41 = vsel %vm333_vm9, -1e+30, %v389_v40 }
 0x1c5   :  { %v393_v42 = vsel %vm392_vm10, %v391_v41, -inf }
 0x1c6   :  { %394 = vmax.xlane.f32.xlu0 %v393_v42 }
 0x24f   :  { %v395_v43 = vpop.xlane.xlu0 %394 }
 0x250   :  { %v396_v44 = vsub.f32 %v391_v41, %v395_v43 }
 0x252   :  { %v397_v45 = vmul.f32 1.442695, %v396_v44 }
 0x254   :  { %632 = vpow2.f32 %v397_v45 }
 0x261   :  { %v633_v46 = vpop.eup %632 }
 0x262   :  { %v399_v47 = vsel %vm392_vm10, %v633_v46, 0.0 }
 0x263   :  { %400 = vadd.xlane.f32.xlu1 %v399_v47  ;;  %v411_v47 = vld [vmem:[#allocation7 + $0x38] sm:$0xff] }
 0x2ec   :  { %v401_v48 = vpop.xlane.xlu1 %400 }
 0x2ed   :  { %634 = vrcp.f32 %v401_v48 }
 0x2fa   :  { %v635_v50 = vpop.eup %634 }
 0x2fb   :  { %v403_v51 = vmul.f32 %v635_v50, %v633_v46 }
 0x2fd   :  { %v422_v52 = vrot.slane %v403_v51, %v421_v49  ;;  %v415_v53 = vrot.slane %v403_v51, %v845_v15  ;;  %v429_v56 = vrot.slane %v403_v51, %v428_v54  ;;  %v443_v57 = vrot.slane %v403_v51, %v442_v55 }
 0x2fe   :  { %v436_v60 = vrot.slane %v403_v51, %v435_v58  ;;  %v457_v61 = vrot.slane %v403_v51, %v456_v59  ;;  %v450_v15 = vrot.slane %v403_v51, %v449_v62  ;;  %v464_v0 = vrot.slane %v403_v51, %v463_v63 }
 0x2ff   :  { %424 = vbcast.lane.b32.xlu1 %v422_v52, 256  ;;  %417 = vbcast.lane.b32.xlu0 %v415_v53, 256 }
 0x303   :  { %431 = vbcast.lane.b32.xlu1 %v429_v56, 256  ;;  %445 = vbcast.lane.b32.xlu0 %v443_v57, 256 }
 0x307   :  { %438 = vbcast.lane.b32.xlu1 %v436_v60, 256  ;;  %459 = vbcast.lane.b32.xlu0 %v457_v61, 256 }
 0x30b   :  { %452 = vbcast.lane.b32.xlu1 %v450_v15, 256  ;;  %558 = vrot.lane.b32.xlu0 %v403_v51, %s774_s5 }
 0x30f   :  { %466 = vbcast.lane.b32.xlu1 %v464_v0, 256 }
 0x371   :  { %v425_v3 = vpop.permute.xlu1 %424  ;;  %v418_v4 = vpop.permute.xlu0 %417 }
 0x372   :  { %v469_v5 = vmul.f32 %v425_v3, %v405_v1  ;;  %v468_v6 = vmul.f32 %v418_v4, %v404_v2 }
 0x374   :  { %v484_v11 = vsel %vm476_vm11, %v469_v5, 0.0  ;;  %v477_v12 = vsel %vm476_vm11, %v468_v6, 0.0 }
 0x375   :  { %v485_v13 = vrot.slane %v484_v11, 4  ;;  %v478_v10 = vrot.slane %v477_v12, 4  ;;  %v432_v14 = vpop.permute.xlu1 %431  ;;  %v446_v16 = vpop.permute.xlu0 %445 }
 0x376   :  { %v470_v17 = vmul.f32 %v432_v14, %v406_v7  ;;  %v472_v18 = vmul.f32 %v446_v16, %v408_v9 }
 0x377   :  { %v486_v19 = vadd.f32 %v485_v13, %v484_v11  ;;  %v479_v20 = vadd.f32 %v478_v10, %v477_v12 }
 0x378   :  { %v491_v23 = vsel %vm476_vm11, %v470_v17, 0.0  ;;  %v505_v24 = vsel %vm476_vm11, %v472_v18, 0.0 }
 0x379   :  { %v487_v25 = vrot.slane %v486_v19, 2  ;;  %v480_v26 = vrot.slane %v479_v20, 2  ;;  %v492_v27 = vrot.slane %v491_v23, 4  ;;  %v506_v28 = vrot.slane %v505_v24, 4  ;;  %v439_v8 = vpop.permute.xlu1 %438  ;;  %v460_v29 = vpop.permute.xlu0 %459 }
 0x37a   :  { %v471_v30 = vmul.f32 %v439_v8, %v407_v21  ;;  %v474_v31 = vmul.f32 %v460_v29, %v410_v22 }
 0x37b   :  { %v488_v32 = vadd.f32 %v487_v25, %v486_v19  ;;  %v493_v33 = vadd.f32 %v492_v27, %v491_v23  ;;  %v507_v34 = vadd.f32 %v506_v28, %v505_v24  ;;  %v481_v36 = vadd.f32 %v480_v26, %v479_v20 }
 0x37c   :  { %v498_v37 = vsel %vm476_vm11, %v471_v30, 0.0  ;;  %v519_v38 = vsel %vm476_vm11, %v474_v31, 0.0 }
 0x37d   :  { %v494_v39 = vrot.slane %v493_v33, 2  ;;  %v453_v40 = vpop.permute.xlu1 %452  ;;  %v508_v41 = vrot.slane %v507_v34, 2  ;;  %v499_v42 = vrot.slane %v498_v37, 4  ;;  %v520_v43 = vrot.slane %v519_v38, 4  ;;  %v559_v25 = vpop.permute.xlu0 %558 }
 0x37e   :  { %v473_v44 = vmul.f32 %v453_v40, %v409_v35  ;;  %v489_v45 = vrot.slane %v488_v32, 1  ;;  %v482_v48 = vrot.slane %v481_v36, 1 }
 0x37f   :  { %v495_v46 = vadd.f32 %v494_v39, %v493_v33  ;;  %v500_v49 = vadd.f32 %v499_v42, %v498_v37  ;;  %v521_v50 = vadd.f32 %v520_v43, %v519_v38  ;;  %v509_v55 = vadd.f32 %v508_v41, %v507_v34 }
 0x380   :  { %v512_v51 = vsel %vm476_vm11, %v473_v44, 0.0  ;;  %v490_v60 = vadd.f32 %v489_v45, %v488_v32  ;;  %v483_v61 = vadd.f32 %v482_v48, %v481_v36 }
 0x381   :  { %v496_v52 = vrot.slane %v495_v46, 1  ;;  %v513_v53 = vrot.slane %v512_v51, 4  ;;  %v467_v54 = vpop.permute.xlu1 %466  ;;  %v501_v56 = vrot.slane %v500_v49, 2  ;;  %v522_v57 = vrot.slane %v521_v50, 2 }
 0x382   :  { %v475_v58 = vmul.f32 %v467_v54, %v411_v47  ;;  %v510_v2 = vrot.slane %v509_v55, 1  ;;  %v549_v7 = vsel %vm376_vm2, %v490_v60, %v483_v61 }
 0x383   :  { %v514_v59 = vadd.f32 %v513_v53, %v512_v51  ;;  %v502_v62 = vadd.f32 %v501_v56, %v500_v49  ;;  %v497_v63 = vadd.f32 %v496_v52, %v495_v46  ;;  %v523_v4 = vadd.f32 %v522_v57, %v521_v50 }
 0x384   :  { %v526_v15 = vsel %vm476_vm11, %v475_v58, 0.0  ;;  %v511_v10 = vadd.f32 %v510_v2, %v509_v55 }
 0x385   :  { %v515_v0 = vrot.slane %v514_v59, 2  ;;  %v527_v1 = vrot.slane %v526_v15, 4  ;;  %v503_v3 = vrot.slane %v502_v62, 1  ;;  %v550_v11 = vsel %vm378_vm3, %v497_v63, %v549_v7 }
 0x386   :  { %v524_v16 = vrot.slane %v523_v4, 1 }
 0x387   :  { %v516_v5 = vadd.f32 %v515_v0, %v514_v59  ;;  %v528_v6 = vadd.f32 %v527_v1, %v526_v15  ;;  %v504_v9 = vadd.f32 %v503_v3, %v502_v62 }
 0x388   :  { %v525_v22 = vadd.f32 %v524_v16, %v523_v4 }
 0x389   :  { %v517_v12 = vrot.slane %v516_v5, 1  ;;  %v529_v13 = vrot.slane %v528_v6, 2  ;;  %v551_v14 = vsel %vm380_vm4, %v504_v9, %v550_v11 }
 0x38a   :  { %v552_v19 = vsel %vm382_vm5, %v511_v10, %v551_v14 }
 0x38b   :  { %v518_v17 = vadd.f32 %v517_v12, %v516_v5  ;;  %v530_v18 = vadd.f32 %v529_v13, %v528_v6 }
 0x38d   :  { %v531_v20 = vrot.slane %v530_v18, 1  ;;  %v553_v21 = vsel %vm384_vm6, %v518_v17, %v552_v19 }
 0x38e   :  { %v554_v24 = vsel %vm386_vm7, %v525_v22, %v553_v21 }
 0x38f   :  { %v532_v23 = vadd.f32 %v531_v20, %v530_v18 }
 0x391   :  { %v555_v26 = vsel %vm388_vm8, %v532_v23, %v554_v24 }
 0x392   :  { %v561_v27 = vsel %vm476_vm11, %v555_v26, %v559_v25 }
 0x393   :  { %v563_v28 = vsel %vm562_vm12, %v561_v27, 0.0 }
 0x394   :  { %564 = vst [vmem:[#allocation11] sm:$0xff] %v563_v28 }
 0x395   :  { %747 = shalt.err (!%p744_p1)
}
 0x396   :  { %574 = dma.vmem_to_hbm [thread:$0]  %s572_s22, 128, %s908_s6, [#allocation4]  }
 0x397   :  { %762 = dma.done.wait [#allocation4], 128  }
 0x398   :  { %763 = vsyncadd [#allocation4], 4294967168 }
 0x399   :  { %578 = vsyncpa [#allocation3], 1 }
 0x39a   :  { %579 = vsyncpa [#allocation6], 1 }
 0x39b   :  { %580 = vsyncpa [#allocation9], 1 }
 0x39c   :  { %581 = vsyncpa [#allocation4], 1 }

</bundles_post_ra>
